<compile_context>
chip_gen: v7x
topology: tpu7x:2x2x1
jax: 0.10.0
libtpu: 0.0.40
codegen_flags: <defaults>
</compile_context>

<pallas_src>
import math

import jax
import jax.numpy as jnp
from jax.experimental import pallas as pl
from jax.experimental.pallas import tpu as pltpu


def _build_pe_table(d_model: int, max_len: int = 5000,
                    dtype=jnp.float32) -> jnp.ndarray:
    """Sinusoidal positional-encoding table, shape (max_len, d_model).

    Matches the PyTorch buffer: even columns sin, odd columns cos.
    """
    assert d_model % 2 == 0, "d_model must be even (as in the PyTorch module)"
    position = jnp.arange(0, max_len, dtype=jnp.float32)[:, None]            # (max_len, 1)
    div_term = jnp.exp(
        jnp.arange(0, d_model, 2, dtype=jnp.float32) * (-math.log(10000.0) / d_model)
    )                                                                         # (d_model//2,)
    sin_part = jnp.sin(position * div_term)                                   # (max_len, d//2)
    cos_part = jnp.cos(position * div_term)                                   # (max_len, d//2)
    pe = jnp.stack([sin_part, cos_part], axis=-1).reshape(max_len, d_model)   # interleave
    return pe.astype(dtype)


def _pe_add_kernel(x_ref, pe_ref, o_ref):
    # x_ref / o_ref: (TB, TF) lane-dense slabs; pe_ref: (1, TF), broadcast over
    # the batch rows (cheap sublane broadcast).  Pure VPU add in x.dtype.
    o_ref[...] = x_ref[...] + pe_ref[...]


def _round_up(x: int, m: int) -> int:
    return ((x + m - 1) // m) * m


def _choose_tiles(B: int, F: int, itemsize: int) -> tuple[int, int]:
    """Pick (TB, TF) batch/lane tile sizes.

    - TB: full batch for modest B, otherwise 64 rows (a multiple of every
      sublane pack) so TF can stay long (long contiguous HBM rows per DMA).
    - TF: multiple of 128, sized so one x block is ~2 MiB *after* sublane
      padding; grid uses cdiv so TF need not divide F (one masked tail block).
    - A final clamp keeps the padded, double-buffered (x + pe + out) footprint
      well inside the scoped VMEM limit on every generation (v7x: 64 MiB).
    """
    pack = max(1, 32 // itemsize)          # physical sublane tile: 8 f32 / 16 bf16 / 32 int8

    TB = B if B <= 64 else 64              # 64 is a multiple of 8/16/32
    TB_pad = _round_up(TB, pack)           # real sublane footprint of one block

    if F <= 128:
        TF = F                             # full-dim block (always legal)
    else:
        target_x_bytes = 2 << 20           # ~2 MiB per x block after padding
        tf = (target_x_bytes // (TB_pad * itemsize) // 128) * 128
        TF = min(max(512, tf), (F // 128) * 128)

        # v7x megacore: keep enough grid steps so ("parallel", ...) actually
        # balances across the 2 TensorCores (and amortizes pipeline ends).
        min_steps = 8
        while TF > 512 and pl.cdiv(F, TF) * pl.cdiv(B, TB) < min_steps:
            TF = max(512, ((TF // 2 + 127) // 128) * 128)

    # Padding-aware, double-buffered footprint clamp: 2 x (x + out + pe) blocks.
    def _footprint(tf):
        return 2 * (2 * TB_pad + pack) * tf * itemsize

    while TF > 128 and _footprint(TF) > (24 << 20):
        TF = max(128, ((TF // 2 + 127) // 128) * 128)

    return TB, TF


def positional_encoding_forward(x: jnp.ndarray, pe_table: jnp.ndarray) -> jnp.ndarray:
    """x: (B, S, D).  Returns x + pe_table[:S] broadcast over batch."""
    B, S, D = x.shape
    F = S * D
    itemsize = jnp.dtype(x.dtype).itemsize

    # pe table is prebuilt in the model dtype at init; per call this is only a
    # slice + (bitcast) reshape.  astype is a no-op when dtypes already match.
    pe_flat = pe_table[:S, :].astype(x.dtype).reshape(1, F)
    x_flat = x.reshape(B, F)

    TB, TF = _choose_tiles(B, F, itemsize)
    # Batch axis innermost: pe's block index is constant across it, so pe is
    # fetched from HBM exactly once in total (Pallas skips unchanged blocks).
    grid = (pl.cdiv(F, TF), pl.cdiv(B, TB))

    out_flat = pl.pallas_call(
        _pe_add_kernel,
        out_shape=jax.ShapeDtypeStruct((B, F), x.dtype),
        grid=grid,
        in_specs=[
            pl.BlockSpec((TB, TF), lambda f, b: (b, f)),   # x slab
            pl.BlockSpec((1, TF), lambda f, b: (0, f)),    # pe slab (read once total)
        ],
        out_specs=pl.BlockSpec((TB, TF), lambda f, b: (b, f)),
        input_output_aliases={0: 0},                       # write result over x's buffer
        cost_estimate=pl.CostEstimate(
            flops=B * F,
            transcendentals=0,
            bytes_accessed=(2 * B * F + F) * itemsize,
        ),
        compiler_params=pltpu.CompilerParams(
            dimension_semantics=("parallel", "parallel"),
            vmem_limit_bytes=32 * 1024 * 1024,
        ),
    )(x_flat, pe_flat)

    return out_flat.reshape(B, S, D)


if __name__ == "__main__":
    # Small shapes consistent with the forward: batch=2, seq=8, d_model=32.
    B, S, D = 2, 8, 32
    key = jax.random.PRNGKey(0)
    x = jax.random.normal(key, (B, S, D), dtype=jnp.float32)

    # Precompute the pe table in the model dtype (init-time, not per call).
    pe_table = _build_pe_table(d_model=D, max_len=5000, dtype=x.dtype)

    # Reference (plain-JAX semantics of the PyTorch forward) computed BEFORE
    # the kernel call, because x is donated to the kernel below.
    ref = x + pe_table[:S, :][None, :, :]
    ref = jax.block_until_ready(ref)

    fwd = jax.jit(positional_encoding_forward, donate_argnums=0)
    out = fwd(x, pe_table)
    out = jax.block_until_ready(out)

    assert out.shape == (B, S, D)
    assert out.dtype == ref.dtype
    assert jnp.allclose(out, ref, atol=1e-6), "mismatch vs reference"

    print("KERNEL_OK")
</pallas_src>

<mosaic_0001>
module attributes {stable_mosaic.version = 11 : i64} {
  func.func @_pe_add_kernel(%arg0: i32, %arg1: i32, %arg2: memref<2x256xf32, #tpu.memory_space<vmem>>, %arg3: memref<1x256xf32, #tpu.memory_space<vmem>>, %arg4: memref<2x256xf32, #tpu.memory_space<vmem>>) attributes {dimension_semantics = [#tpu.dimension_semantics<parallel>, #tpu.dimension_semantics<parallel>], iteration_bounds = array<i64: 1, 1>, scalar_prefetch = 0 : i64, scratch_operands = 0 : i64, tpu.core_type = #tpu.core_type<tc>, window_params = [{transform_indices = @transform_0, window_bounds = array<i64: 2, 256>}, {transform_indices = @transform_1, window_bounds = array<i64: 1, 256>}, {transform_indices = @transform_2, window_bounds = array<i64: 2, 256>}]} {
    %c0 = arith.constant 0 : index
    %c0_0 = arith.constant 0 : index
    %0 = vector.load %arg2[%c0, %c0_0] : memref<2x256xf32, #tpu.memory_space<vmem>>, vector<2x256xf32>
    %c0_1 = arith.constant 0 : index
    %c0_2 = arith.constant 0 : index
    %1 = vector.load %arg3[%c0_1, %c0_2] : memref<1x256xf32, #tpu.memory_space<vmem>>, vector<1x256xf32>
    %2 = vector.broadcast %1 : vector<1x256xf32> to vector<2x256xf32>
    %3 = arith.addf %0, %2 : vector<2x256xf32>
    %c0_3 = arith.constant 0 : index
    %c0_4 = arith.constant 0 : index
    %4 = vector.load %arg4[%c0_3, %c0_4] : memref<2x256xf32, #tpu.memory_space<vmem>>, vector<2x256xf32>
    tpu.vector_store %arg4[%c0_3, %c0_4], %3 {strides = array<i32>} : memref<2x256xf32, #tpu.memory_space<vmem>>, vector<2x256xf32>,
    return
  }
  func.func @transform_0(%arg0: i32, %arg1: i32) -> (i32, i32) {
    %c0_i32 = arith.constant 0 : i32
    return %arg1, %arg0 : i32, i32
  }
  func.func @transform_1(%arg0: i32, %arg1: i32) -> (i32, i32) {
    %c0_i32 = arith.constant 0 : i32
    %c0_i32_0 = arith.constant 0 : i32
    return %c0_i32, %arg0 : i32, i32
  }
  func.func @transform_2(%arg0: i32, %arg1: i32) -> (i32, i32) {
    %c0_i32 = arith.constant 0 : i32
    return %arg1, %arg0 : i32, i32
  }
}

</mosaic_0001>

<bundles_post_ra>
// kernel: positional_encoding_forward.1
= control target key start
LH: loop header
LB: loop body
LE: loop exit
PB: predicated region body
PF: predicated region fallthrough
CT: control target
= control target key end

     0   :  { %v14_v0 = vlaneseq  ;;  %v38_v1 = vmov 1983009808   ;;  %s63_s1 = inlined_call_operand.vmem [shape: f32[1,256], index: 1, kind: input, shape index: {}]   ;;  %s64_s0 = inlined_call_operand.vmem [shape: f32[2,256], index: 0, kind: input, shape index: {}, may-alias: {0,2}]   ;;  %s65_s2 = inlined_call_operand.vmem [shape: f32[2,256], index: 2, kind: output, shape index: {}, may-alias: {0,2}]  }
   0x1   :  { %v24_v2 = vunpack.c.l.s4 %v38_v1  ;;  %v12_v4 = vld [vmem:[%s63_s1] sm:$0x3] }
   0x2   :  { %v15_v3 = vshrl.u32 %v14_v0, 7  ;;  %v11_v12 = vld [vmem:[%s64_s0] sm:$0xf] }
   0x3   :  { %v25_v5 = vunpack.c.0.s8 %v24_v2 }
   0x4   :  { %v16_v6 = vsub.s32 0, %v15_v3  ;;  %v20_v7 = vsub.s32 1, %v15_v3 }
   0x5   :  { %v28_v10 = vsub.s32 %v25_v5, %v15_v3 }
   0x6   :  { %v17_v8 = vrot.slane %v12_v4, %v16_v6  ;;  %v21_v9 = vrot.slane %v12_v4, %v20_v7 }
   0x8   :  { %v22_v11 = vcombine.low %v17_v8, %v21_v9 }
   0xa   :  { %v29_v13 = vrot.slane %v22_v11, %v28_v10 }
   0xc   :  { %v31_v14 = vadd.f32 %v29_v13, %v11_v12 }
   0xe   :  { %32 = vst [vmem:[%s65_s2] sm:$0xf] %v31_v14 }

</bundles_post_ra>
